<compile_context>
chip_gen: v6e
topology: v6e:2x2x1
jax: 0.10.0
libtpu: 0.0.40
codegen_flags: <defaults>
</compile_context>

<pallas_src>
import functools

import jax
import jax.numpy as jnp
from jax.experimental import pallas as pl
from jax.experimental.pallas import tpu as pltpu

_LANES = 128  # lane width of a vreg


def _chip_config():
    """Returns (max_block_rows, vmem_limit_bytes, tensorcores_per_chip)."""
    try:
        kind = jax.devices()[0].device_kind.lower()
    except Exception:
        kind = ""
    if "v7" in kind:
        # 2 TCs share HBM; 4096x128 f32 = 2 MiB/tile keeps per-step overhead
        # small while staying well inside the 64 MiB physical VMEM.
        return 4096, 40 * 1024 * 1024, 2
    if "v6" in kind:
        # 8192x128 f32 = 4 MiB/tile -> ~6 us of HBM per step vs ~0.35 us fixed.
        return 8192, 56 * 1024 * 1024, 1
    if "v5" in kind:
        return 4096, 32 * 1024 * 1024, 1
    return 4096, 32 * 1024 * 1024, 1


def _accum_block(x_ref, t_ref, o_ref, block_rows, row_limit=None):
    """Fold one (block_rows, 128) tile into the resident (3, 8, 128) accumulator.

    Accumulates th = tanh(x/2) (not sigmoid): the affine sigmoid = 0.5*th + 0.5
    is applied once in the wrapper, and zeros contribute nothing to any sum.
    """
    x = x_ref[...].astype(jnp.float32)
    t = t_ref[...].astype(jnp.float32)
    if row_limit is not None and row_limit < block_rows:
        r = jax.lax.broadcasted_iota(jnp.int32, (block_rows, _LANES), 0)
        m = r < row_limit
        x = jnp.where(m, x, 0.0)   # mask garbage (possibly NaN) BEFORE tanh
        t = jnp.where(m, t, 0.0)
    th = jnp.tanh(0.5 * x)         # single EUP transcendental per element
    groups = block_rows // 8
    # (block_rows,128) -> (8,128) fold over the leading (non-tiled) axis: pure VPU adds.
    o_ref[0] += jnp.sum((th * t).reshape(groups, 8, _LANES), axis=0)
    o_ref[1] += jnp.sum(th.reshape(groups, 8, _LANES), axis=0)
    o_ref[2] += jnp.sum(t.reshape(groups, 8, _LANES), axis=0)


def _dice_kernel_1d(x_ref, t_ref, o_ref, *, rows, block_rows, nb):
    """1-D streaming reduction (single-TensorCore chips): grid = (nb,)."""
    i = pl.program_id(0)

    @pl.when(i == 0)
    def _init():
        o_ref[...] = jnp.zeros_like(o_ref)

    if rows % block_rows != 0:                     # trace-time: tail block is ragged
        tail_rows = rows - (nb - 1) * block_rows

        @pl.when(i < nb - 1)
        def _fast():
            _accum_block(x_ref, t_ref, o_ref, block_rows)

        @pl.when(i == nb - 1)
        def _tail():
            _accum_block(x_ref, t_ref, o_ref, block_rows, row_limit=tail_rows)
    else:
        _accum_block(x_ref, t_ref, o_ref, block_rows)


def _dice_kernel_2core(x_ref, t_ref, o_ref, *, rows, block_rows, nb, jpc, start1):
    """2-way core split (v7x): grid = (2, jpc); core c owns blocks [c*jpc, ...).

    Core 1's range [start1, nb) may overlap core 0's by one block when nb is
    odd; the duplicate block is skipped entirely (pl.when(owned)).
    """
    c = pl.program_id(0)
    j = pl.program_id(1)
    blk = c * start1 + j

    @pl.when(j == 0)
    def _init():
        o_ref[...] = jnp.zeros_like(o_ref)

    owned = blk >= c * jpc

    if rows % block_rows != 0:
        tail_rows = rows - (nb - 1) * block_rows

        @pl.when(jnp.logical_and(owned, blk < nb - 1))
        def _fast():
            _accum_block(x_ref, t_ref, o_ref, block_rows)

        @pl.when(jnp.logical_and(owned, blk == nb - 1))
        def _tail():
            _accum_block(x_ref, t_ref, o_ref, block_rows, row_limit=tail_rows)
    else:
        @pl.when(owned)
        def _all():
            _accum_block(x_ref, t_ref, o_ref, block_rows)


def dice_loss(inputs, targets, smooth=1.0):
    """Pallas equivalent of DiceLoss.forward(inputs, targets, smooth)."""
    x = inputs.reshape(-1)
    t = targets.reshape(-1)
    if t.dtype == jnp.bool_:
        # TODO(synk): stream the packed bool buffer directly once i1 kernel
        # inputs are reliably supported; this extra pass only triggers for bool.
        t = t.astype(jnp.int8)

    n = x.shape[0]
    rem = n % _LANES
    n_main = n - rem

    # --- <=127 leftover elements: plain jnp (negligible), no full-array pad ---
    if rem:
        x_tail = x[n_main:].astype(jnp.float32)
        t_tail = t[n_main:].astype(jnp.float32)
        p_tail = jax.nn.sigmoid(x_tail)
        tail_inter = jnp.sum(p_tail * t_tail)
        tail_p = jnp.sum(p_tail)
        tail_t = jnp.sum(t_tail)
    else:
        tail_inter = tail_p = tail_t = 0.0

    if n_main == 0:
        # Degenerate (<128 elements): everything was handled above.
        inter = tail_inter
        sum_p = tail_p
        sum_t = tail_t
    else:
        rows = n_main // _LANES
        max_block_rows, vmem_limit, num_cores = _chip_config()

        x_pref = x if rem == 0 else x[:n_main]   # contiguous prefix (no pad copy)
        t_pref = t if rem == 0 else t[:n_main]

        if rows >= 32:
            # Multiple of 32 rows satisfies f32/bf16/int8 sublane tiling.
            block_rows = min(max_block_rows, (rows // 32) * 32)
            x2 = x_pref.reshape(rows, _LANES)
            t2 = t_pref.reshape(rows, _LANES)
            kern_rows = rows                     # ragged tail masked in-kernel
        else:
            # Tiny input: one full-array block; pad rows to a multiple of 8.
            # Zero rows contribute nothing to the tanh-based sums (no masking).
            rows_p = ((rows + 7) // 8) * 8
            block_rows = rows_p
            x2 = x_pref.reshape(rows, _LANES)
            t2 = t_pref.reshape(rows, _LANES)
            if rows_p != rows:
                x2 = jnp.pad(x2, ((0, rows_p - rows), (0, 0)))
                t2 = jnp.pad(t2, ((0, rows_p - rows), (0, 0)))
            kern_rows = rows_p

        nb = pl.cdiv(kern_rows, block_rows)

        if num_cores == 2 and nb >= 2:
            # v7x: split row-blocks across the two TensorCores.
            jpc = pl.cdiv(nb, 2)
            start1 = nb - jpc
            in_spec = pl.BlockSpec((block_rows, _LANES),
                                   lambda c, j: (c * start1 + j, 0))
            out = pl.pallas_call(
                functools.partial(_dice_kernel_2core, rows=kern_rows,
                                  block_rows=block_rows, nb=nb, jpc=jpc,
                                  start1=start1),
                out_shape=jax.ShapeDtypeStruct((2 * 3, 8, _LANES), jnp.float32),
                grid_spec=pltpu.PrefetchScalarGridSpec(
                    num_scalar_prefetch=0,
                    grid=(2, jpc),
                    in_specs=[in_spec, in_spec],
                    out_specs=pl.BlockSpec((3, 8, _LANES), lambda c, j: (c, 0, 0)),
                ),
                compiler_params=pltpu.CompilerParams(
                    dimension_semantics=("parallel", "arbitrary"),
                    vmem_limit_bytes=vmem_limit),
            )(x2, t2)
            part = jnp.sum(out.reshape(2, 3, 8, _LANES), axis=(0, 2, 3))
        else:
            # Single-TensorCore chips: plain 1-D streaming grid.
            in_spec = pl.BlockSpec((block_rows, _LANES), lambda i: (i, 0))
            out = pl.pallas_call(
                functools.partial(_dice_kernel_1d, rows=kern_rows,
                                  block_rows=block_rows, nb=nb),
                out_shape=jax.ShapeDtypeStruct((3, 8, _LANES), jnp.float32),
                grid_spec=pltpu.PrefetchScalarGridSpec(
                    num_scalar_prefetch=0,
                    grid=(nb,),
                    in_specs=[in_spec, in_spec],
                    out_specs=pl.BlockSpec((3, 8, _LANES), lambda i: (0, 0, 0)),
                ),
                compiler_params=pltpu.CompilerParams(
                    dimension_semantics=("arbitrary",),
                    vmem_limit_bytes=vmem_limit),
            )(x2, t2)
            part = jnp.sum(out, axis=(1, 2))

        s_tht, s_th, s_t = part[0], part[1], part[2]
        # sigmoid(x) = 0.5*tanh(x/2) + 0.5  (affine hoisted out of the hot loop)
        inter = 0.5 * s_tht + 0.5 * s_t + tail_inter
        sum_p = 0.5 * s_th + 0.5 * n_main + tail_p
        sum_t = s_t + tail_t

    dice = (2.0 * inter + smooth) / (sum_p + sum_t + smooth)
    return 1.0 - dice


def _dice_loss_ref(inputs, targets, smooth=1.0):
    p = jax.nn.sigmoid(inputs.astype(jnp.float32)).reshape(-1)
    t = targets.astype(jnp.float32).reshape(-1)
    inter = jnp.sum(p * t)
    dice = (2.0 * inter + smooth) / (jnp.sum(p) + jnp.sum(t) + smooth)
    return 1.0 - dice


if __name__ == "__main__":
    key = jax.random.PRNGKey(0)

    # (shape) cases: main NCHW shape; ragged blocks + 128-remainder; tiny with
    # row padding + remainder; sub-128 (wrapper-only) degenerate case.
    shapes = [(2, 4, 16, 16), (41, 127), (9, 130), (5, 7)]

    for idx, shp in enumerate(shapes):
        k1, k2 = jax.random.split(jax.random.fold_in(key, idx))
        x = jax.random.normal(k1, shp, dtype=jnp.float32)
        tgt = (jax.random.uniform(k2, shp) > 0.5).astype(jnp.float32)

        loss = dice_loss(x, tgt, smooth=1.0)
        jax.block_until_ready(loss)

        ref = _dice_loss_ref(x, tgt, smooth=1.0)
        assert jnp.allclose(loss, ref, atol=3e-5, rtol=3e-5), (shp, loss, ref)

    print("KERNEL_OK")
</pallas_src>

<mosaic_0001>
module attributes {stable_mosaic.version = 11 : i64} {
  func.func @_dice_kernel_1d(%arg0: i32, %arg1: memref<16x128xf32, #tpu.memory_space<vmem>>, %arg2: memref<16x128xf32, #tpu.memory_space<vmem>>, %arg3: memref<3x8x128xf32, #tpu.memory_space<vmem>>) attributes {dimension_semantics = [#tpu.dimension_semantics<arbitrary>], iteration_bounds = array<i64: 1>, scalar_prefetch = 0 : i64, scratch_operands = 0 : i64, tpu.core_type = #tpu.core_type<tc>, window_params = [{transform_indices = @transform_0, window_bounds = array<i64: 16, 128>}, {transform_indices = @transform_1, window_bounds = array<i64: 16, 128>}, {pipeline_mode = #tpu.pipeline_mode<synchronous>, transform_indices = @transform_2, window_bounds = array<i64: 3, 8, 128>}]} {
    %c0_i32 = arith.constant 0 : i32
    %0 = arith.cmpi eq, %arg0, %c0_i32 : i32
    %1 = arith.extui %0 : i1 to i32
    %c0_i32_0 = arith.constant 0 : i32
    %2 = arith.cmpi ne, %1, %c0_i32_0 : i32
    scf.if %2 {
      %cst_23 = arith.constant 0.000000e+00 : f32
      %33 = vector.broadcast %cst_23 : f32 to vector<3x8x128xf32>
      %c0_24 = arith.constant 0 : index
      %c0_25 = arith.constant 0 : index
      %c0_26 = arith.constant 0 : index
      %34 = vector.load %arg3[%c0_24, %c0_25, %c0_26] : memref<3x8x128xf32, #tpu.memory_space<vmem>>, vector<3x8x128xf32>
      tpu.vector_store %arg3[%c0_24, %c0_25, %c0_26], %33 {strides = array<i32>} : memref<3x8x128xf32, #tpu.memory_space<vmem>>, vector<3x8x128xf32>,
    } else {
    }
    %c0 = arith.constant 0 : index
    %c0_1 = arith.constant 0 : index
    %3 = vector.load %arg1[%c0, %c0_1] : memref<16x128xf32, #tpu.memory_space<vmem>>, vector<16x128xf32>
    %c0_2 = arith.constant 0 : index
    %c0_3 = arith.constant 0 : index
    %4 = vector.load %arg2[%c0_2, %c0_3] : memref<16x128xf32, #tpu.memory_space<vmem>>, vector<16x128xf32>
    %cst = arith.constant 5.000000e-01 : f32
    %5 = vector.broadcast %cst : f32 to vector<16x128xf32>
    %6 = arith.mulf %5, %3 : vector<16x128xf32>
    %7 = math.tanh %6 : vector<16x128xf32>
    %c0_4 = arith.constant 0 : index
    %c0_5 = arith.constant 0 : index
    %c0_6 = arith.constant 0 : index
    %8 = vector.load %arg3[%c0_4, %c0_5, %c0_6] : memref<3x8x128xf32, #tpu.memory_space<vmem>>, vector<1x8x128xf32>
    %9 = vector.shape_cast %8 : vector<1x8x128xf32> to vector<8x128xf32>
    %10 = arith.mulf %7, %4 : vector<16x128xf32>
    %11 = vector.shape_cast %10 : vector<16x128xf32> to vector<2x8x128xf32>
    %cst_7 = arith.constant dense<0.000000e+00> : vector<8x128xf32>
    %12 = vector.multi_reduction <add>, %11, %cst_7 [0] : vector<2x8x128xf32> to vector<8x128xf32>
    %13 = arith.addf %9, %12 : vector<8x128xf32>
    %c0_8 = arith.constant 0 : index
    %c0_9 = arith.constant 0 : index
    %c0_10 = arith.constant 0 : index
    %14 = vector.load %arg3[%c0_8, %c0_9, %c0_10] : memref<3x8x128xf32, #tpu.memory_space<vmem>>, vector<1x8x128xf32>
    %15 = vector.shape_cast %14 : vector<1x8x128xf32> to vector<8x128xf32>
    %16 = vector.shape_cast %13 : vector<8x128xf32> to vector<1x8x128xf32>
    tpu.vector_store %arg3[%c0_8, %c0_9, %c0_10], %16 {strides = array<i32>} : memref<3x8x128xf32, #tpu.memory_space<vmem>>, vector<1x8x128xf32>,
    %c1 = arith.constant 1 : index
    %c0_11 = arith.constant 0 : index
    %c0_12 = arith.constant 0 : index
    %17 = vector.load %arg3[%c1, %c0_11, %c0_12] : memref<3x8x128xf32, #tpu.memory_space<vmem>>, vector<1x8x128xf32>
    %18 = vector.shape_cast %17 : vector<1x8x128xf32> to vector<8x128xf32>
    %19 = vector.shape_cast %7 : vector<16x128xf32> to vector<2x8x128xf32>
    %cst_13 = arith.constant dense<0.000000e+00> : vector<8x128xf32>
    %20 = vector.multi_reduction <add>, %19, %cst_13 [0] : vector<2x8x128xf32> to vector<8x128xf32>
    %21 = arith.addf %18, %20 : vector<8x128xf32>
    %c1_14 = arith.constant 1 : index
    %c0_15 = arith.constant 0 : index
    %c0_16 = arith.constant 0 : index
    %22 = vector.load %arg3[%c1_14, %c0_15, %c0_16] : memref<3x8x128xf32, #tpu.memory_space<vmem>>, vector<1x8x128xf32>
    %23 = vector.shape_cast %22 : vector<1x8x128xf32> to vector<8x128xf32>
    %24 = vector.shape_cast %21 : vector<8x128xf32> to vector<1x8x128xf32>
    tpu.vector_store %arg3[%c1_14, %c0_15, %c0_16], %24 {strides = array<i32>} : memref<3x8x128xf32, #tpu.memory_space<vmem>>, vector<1x8x128xf32>,
    %c2 = arith.constant 2 : index
    %c0_17 = arith.constant 0 : index
    %c0_18 = arith.constant 0 : index
    %25 = vector.load %arg3[%c2, %c0_17, %c0_18] : memref<3x8x128xf32, #tpu.memory_space<vmem>>, vector<1x8x128xf32>
    %26 = vector.shape_cast %25 : vector<1x8x128xf32> to vector<8x128xf32>
    %27 = vector.shape_cast %4 : vector<16x128xf32> to vector<2x8x128xf32>
    %cst_19 = arith.constant dense<0.000000e+00> : vector<8x128xf32>
    %28 = vector.multi_reduction <add>, %27, %cst_19 [0] : vector<2x8x128xf32> to vector<8x128xf32>
    %29 = arith.addf %26, %28 : vector<8x128xf32>
    %c2_20 = arith.constant 2 : index
    %c0_21 = arith.constant 0 : index
    %c0_22 = arith.constant 0 : index
    %30 = vector.load %arg3[%c2_20, %c0_21, %c0_22] : memref<3x8x128xf32, #tpu.memory_space<vmem>>, vector<1x8x128xf32>
    %31 = vector.shape_cast %30 : vector<1x8x128xf32> to vector<8x128xf32>
    %32 = vector.shape_cast %29 : vector<8x128xf32> to vector<1x8x128xf32>
    tpu.vector_store %arg3[%c2_20, %c0_21, %c0_22], %32 {strides = array<i32>} : memref<3x8x128xf32, #tpu.memory_space<vmem>>, vector<1x8x128xf32>,
    return
  }
  func.func @transform_0(%arg0: i32) -> (i32, i32) {
    %c0_i32 = arith.constant 0 : i32
    %c0_i32_0 = arith.constant 0 : i32
    return %arg0, %c0_i32 : i32, i32
  }
  func.func @transform_1(%arg0: i32) -> (i32, i32) {
    %c0_i32 = arith.constant 0 : i32
    %c0_i32_0 = arith.constant 0 : i32
    return %arg0, %c0_i32 : i32, i32
  }
  func.func @transform_2(%arg0: i32) -> (i32, i32, i32) {
    %c0_i32 = arith.constant 0 : i32
    %c0_i32_0 = arith.constant 0 : i32
    %c0_i32_1 = arith.constant 0 : i32
    %c0_i32_2 = arith.constant 0 : i32
    return %c0_i32, %c0_i32_0, %c0_i32_1 : i32, i32, i32
  }
}

</mosaic_0001>

<bundles_post_ra>
// kernel: tpu_custom_call.1
= control target key start
LH: loop header
LB: loop body
LE: loop exit
PB: predicated region body
PF: predicated region fallthrough
CT: control target
= control target key end

     0   :  { %7 = vsyncpa [#allocation3], 0  ;;  %s203_s0 = inlined_call_operand.hbm [shape: f32[16,128], index: 0, kind: input, shape index: {}]   ;;  %s204_s1 = inlined_call_operand.hbm [shape: f32[16,128], index: 1, kind: input, shape index: {}]   ;;  %s205_s2 = inlined_call_operand.hbm [shape: f32[3,8,128], index: 2, kind: output, shape index: {}]  }
   0x1   :  { %8 = vsyncpa [#allocation6], 0 }
   0x2   :  { %9 = vsyncpa [#allocation4], 0  ;;  %s165_s9 = smov [#allocation2]  }
   0x3   :  { %s15_s10 = sshll.u32 %s165_s9, 4  ;;  %s16_s10 = int_to_ptr.vmem [resolvable:$true] %s15_s10 }
   0x4   :  { %s107_s11 = scalar_lea.vmem %s16_s10, 256  ;;  %p112_p1 = scmp.lt.s32.totalorder %s16_s10, %s16_s10 }
   0x5   :  { %p108_p0 = scmp.ne.s32.totalorder %s16_s10, %s107_s11  ;;  %p113_p2 = scmp.lt.s32.totalorder %s107_s11, %s107_s11 }
   0x7   :  { %p114_p3 = por %p113_p2, %p112_p1 }
   0x9   :  { %p115_p4 = pnand %p114_p3, %p108_p0 }
   0xb   :  { %118 = shalt.err (!%p115_p4)
}
   0xc   :  { %s166_s12 = smov 128   ;;  %s167_s13 = smov 8  }
   0xd   :  { %21 = dma.hbm_to_vmem [thread:$0]  %s203_s0, 256, %s16_s10, [#allocation3], %s166_s12, %s166_s12, %s167_s13  }
   0xe   :  { %s168_s16 = smov [#allocation5]  }
   0xf   :  { %s27_s17 = sshll.u32 %s168_s16, 4  ;;  %s28_s17 = int_to_ptr.vmem [resolvable:$true] %s27_s17 }
  0x10   :  { %s127_s18 = scalar_lea.vmem %s28_s17, 256  ;;  %p132_p6 = scmp.lt.s32.totalorder %s28_s17, %s28_s17 }
  0x11   :  { %p128_p5 = scmp.ne.s32.totalorder %s28_s17, %s127_s18  ;;  %p133_p7 = scmp.lt.s32.totalorder %s127_s18, %s127_s18 }
  0x13   :  { %p134_p8 = por %p133_p7, %p132_p6 }
  0x15   :  { %p135_p9 = pnand %p134_p8, %p128_p5 }
  0x17   :  { %138 = shalt.err (!%p135_p9)
}
  0x18   :  { %33 = dma.hbm_to_vmem [thread:$0]  %s204_s1, 256, %s28_s17, [#allocation6], %s166_s12, %s166_s12, %s167_s13  }
  0x19   :  { %159 = dma.done.wait [#allocation3], 256  }
  0x1a   :  { %160 = vsyncadd [#allocation3], 4294967040 }
  0x1b   :  { %161 = dma.done.wait [#allocation6], 256  }
  0x1c   :  { %162 = vsyncadd [#allocation6], 4294967040  ;;  %v47_v0 = vld [vmem:[#allocation2] sm:$0xff]  ;;  %v48_v1 = vld [vmem:[#allocation2 + $0x8] sm:$0xff]  ;;  %s169_s0 = smov [#allocation7]  }
  0x1d   :  { %v49_v2 = vld [vmem:[#allocation5] sm:$0xff]  ;;  %v50_v3 = vld [vmem:[#allocation5 + $0x8] sm:$0xff]  ;;  %v51_v4 = vmul.f32 0.5, %v47_v0  ;;  %v52_v5 = vmul.f32 0.5, %v48_v1  ;;  %s76_s1 = sshll.u32 %s169_s0, 4  ;;  %s77_s1 = int_to_ptr.vmem [resolvable:$true] %s76_s1 }
  0x1e   :  { %v68_v6 = vadd.f32 %v50_v3, %v49_v2  ;;  %s139_s21 = scalar_lea.vmem %s77_s1, 384  ;;  %p144_p11 = scmp.lt.s32.totalorder %s77_s1, %s77_s1 }
  0x1f   :  { %95 = vtanh.f32 %v51_v4  ;;  %p140_p10 = scmp.ne.s32.totalorder %s77_s1, %s139_s21  ;;  %p145_p12 = scmp.lt.s32.totalorder %s139_s21, %s139_s21 }
  0x20   :  { %97 = vtanh.f32 %v52_v5  ;;  %70 = vst [vmem:[#allocation7 + $0x10] sm:$0xff] %v68_v6 }
  0x21   :  { %p146_p13 = por %p145_p12, %p144_p11 }
  0x23   :  { %p147_p0 = pnand %p146_p13, %p140_p10 }
  0x2c   :  { %v96_v7 = vpop.eup %95 }
  0x2d   :  { %v98_v8 = vpop.eup %97  ;;  %v56_v9 = vmul.f32 %v96_v7, %v49_v2 }
  0x2e   :  { %v57_v10 = vmul.f32 %v98_v8, %v50_v3  ;;  %v63_v11 = vadd.f32 %v98_v8, %v96_v7 }
  0x30   :  { %v58_v12 = vadd.f32 %v57_v10, %v56_v9  ;;  %65 = vst [vmem:[#allocation7 + $0x8] sm:$0xff] %v63_v11 }
  0x32   :  { %60 = vst [vmem:[#allocation7] sm:$0xff] %v58_v12 }
  0x33   :  { %150 = shalt.err (!%p147_p0)
}
  0x34   :  { %82 = dma.vmem_to_hbm [thread:$0]  %s77_s1, 384, %s205_s2, [#allocation4], %s166_s12, %s166_s12, %s167_s13  }
  0x35   :  { %163 = dma.done.wait [#allocation4], 384  }
  0x36   :  { %164 = vsyncadd [#allocation4], 4294966912 }
  0x37   :  { %86 = vsyncpa [#allocation3], 1 }
  0x38   :  { %87 = vsyncpa [#allocation6], 1 }
  0x39   :  { %88 = vsyncpa [#allocation4], 1 }

</bundles_post_ra>
